<compile_context>
chip_gen: v7x
topology: tpu7x:2x2x1
jax: 0.10.0
libtpu: 0.0.40
codegen_flags: <defaults>
</compile_context>

<pallas_src>
import functools

import jax
import jax.numpy as jnp
from jax import lax
from jax.experimental import pallas as pl
from jax.experimental.pallas import tpu as pltpu


_PER_SAMPLE_MIN_BYTES = 1 << 20  # >= 1 MiB/sample -> per-sample mirrored path is worthwhile


def _device_config():
    """Pick {tile_bytes, buffer_count, vmem_limit_bytes} for the current TPU generation."""
    vmem_bytes = 0
    try:
        info = pltpu.get_tpu_info()
        vmem_bytes = int(getattr(info, "vmem_capacity_bytes", 0) or 0)
    except Exception:
        vmem_bytes = 0
    if vmem_bytes > (64 << 20):
        # v5e / v6e class (128 MiB VMEM): 4 MiB tiles, Buffered(3) -> 3*2*4 = 24 MiB used;
        # limit raised above v5e's 16 MiB scoped default.
        return {"tile_bytes": 4 << 20, "buffer_count": 3, "vmem_limit_bytes": 64 << 20}
    # v7x class (64 MiB VMEM, 3.2 TB/s HBM) and unknown chips: bigger tiles to amortize the
    # per-step overhead, shallower buffering so 2*2*8 = 32 MiB fits the 48 MiB limit.
    return {"tile_bytes": 8 << 20, "buffer_count": 2, "vmem_limit_bytes": 48 << 20}


def _row_tile(num_rows, lane_width, itemsize, tile_bytes):
    """Row tile that is a legal sublane multiple and moves ~tile_bytes per block."""
    sub = max(8, 32 // itemsize)  # 8 (f32), 16 (bf16), 32 (int8/fp8)
    t = (tile_bytes // max(1, lane_width * itemsize) // sub) * sub
    t = max(sub, t)
    return num_rows if t >= num_rows else t  # full extent is always a legal block dim


def _segment_reverse_lanes(x, seg_width):
    """Reverse each contiguous `seg_width`-wide segment along the last (lane) axis.

    Requires seg_width to be a power of two that divides x.shape[-1].  Implemented as
    log2(seg_width) butterfly stages (result[lane] = x[lane ^ (seg_width-1)]) built from
    full-lane-width pltpu.roll rotations + selects: pure XLU/VPU work, every op lane-dense.
    The per-stage select mask is derived from a rotated lane-index iota, so the result is
    independent of the rotation-direction convention of pltpu.roll.
    """
    L = x.shape[-1]
    lane = lax.broadcasted_iota(jnp.int32, (1, L), 1)
    out = x
    bit = 1
    while bit < seg_width:
        a = pltpu.roll(out, shift=bit, axis=1)
        b = pltpu.roll(out, shift=L - bit, axis=1)
        a_src = pltpu.roll(lane, shift=bit, axis=1)
        # `a` holds x[lane ^ bit] exactly where the rotated source index is the XOR partner;
        # otherwise the partner sits in the opposite rotation `b`.
        take_a = (a_src ^ lane) == bit
        out = jnp.where(take_a, a, b)
        bit *= 2
    return out


def _rowflip_kernel(flag_ref, x_ref, o_ref, *, seg_width, packed):
    """flag_ref: VMEM int32 (TS, 1), nonzero => flip that row.
    x_ref / o_ref: VMEM (TS, L) blocks; L is lane-dense whenever packing was possible."""
    x = x_ref[...]
    if packed:
        flipped = _segment_reverse_lanes(x, seg_width)
    else:
        flipped = lax.rev(x, dimensions=(1,))
    flag = flag_ref[...] != 0  # (TS, 1) bool, broadcast over lanes (VPU select; DMA-bound)
    o_ref[...] = jnp.where(flag, flipped, x)


def _per_sample_kernel(flips_ref, x_ref, o_ref):
    """flips_ref: SMEM int32[N] (nonzero => flip).  x_ref/o_ref: (TS, 128) VMEM blocks."""
    flip = flips_ref[pl.program_id(0)]

    @pl.when(flip != 0)
    def _():
        x = x_ref[...]
        o_ref[...] = lax.rev(x, dimensions=(x.ndim - 1,))

    @pl.when(flip == 0)
    def _():
        o_ref[...] = x_ref[...]


def _flip_fused_rows(x, flips, cfg, *, donate):
    """Batch-fused path: (N,C,H,W) -> (rows, L) with a per-row flip flag."""
    N, C, H, W = x.shape
    itemsize = x.dtype.itemsize
    R = C * H  # image rows per sample

    # Lane packing: fold 128//W consecutive image rows into one 128-lane packed row when W is
    # a power of two < 128 and the fold does not straddle a sample boundary.
    k = 1
    if 0 < W < 128 and (W & (W - 1)) == 0 and 128 % W == 0 and R % (128 // W) == 0:
        k = 128 // W
    L = k * W
    total_rows = (N * R) // k

    x2 = x.reshape(total_rows, L)  # row-major bitcast: no data movement
    flags = jnp.repeat(flips, R // k).reshape(total_rows, 1)

    TS = _row_tile(total_rows, L, itemsize, cfg["tile_bytes"])
    grid = (pl.cdiv(total_rows, TS),)
    bc = cfg["buffer_count"]

    kern = functools.partial(_rowflip_kernel, seg_width=W, packed=(k > 1))
    data_block = (TS, L)
    # Partial last row-tile relies on Pallas block padding; safe here because the reverse is
    # only along the fully-tiled lane axis (padded rows never mix into valid rows).
    in_specs = [
        pl.BlockSpec((TS, 1), lambda r: (r, 0)),  # tiny per-row flag column
        pl.BlockSpec(data_block, lambda r: (r, 0), pipeline_mode=pl.Buffered(bc)),
    ]
    out_spec = pl.BlockSpec(data_block, lambda r: (r, 0), pipeline_mode=pl.Buffered(bc))

    out2 = pl.pallas_call(
        kern,
        out_shape=jax.ShapeDtypeStruct((total_rows, L), x.dtype),
        grid_spec=pltpu.PrefetchScalarGridSpec(
            num_scalar_prefetch=0,
            grid=grid,
            in_specs=in_specs,
            out_specs=out_spec,
        ),
        compiler_params=pltpu.CompilerParams(
            dimension_semantics=("parallel",),
            vmem_limit_bytes=cfg["vmem_limit_bytes"],
        ),
        # Safe alias: every grid step reads input block r strictly before writing output
        # block r, and distinct steps touch disjoint blocks.
        input_output_aliases=({1: 0} if donate else {}),
    )(flags, x2)
    return out2.reshape(N, C, H, W)


def _flip_per_sample(x, flips, cfg):
    """Per-sample path for large (or W>128) images with W % 128 == 0: the coarse flip is a
    mirrored output column-block index (from the scalar-prefetched flips); the kernel only
    reverses the 128 lanes inside the tile.  Every store is an unmasked, lane-dense vst."""
    N, C, H, W = x.shape
    R = C * H
    itemsize = x.dtype.itemsize
    x3 = x.reshape(N, R, W)

    WT = 128
    nW = W // WT
    TS = _row_tile(R, WT, itemsize, cfg["tile_bytes"])
    grid = (N, pl.cdiv(R, TS), nW)
    bc = cfg["buffer_count"]

    def in_map(n, r, w, flips_ref):
        return (n, r, w)

    def out_map(n, r, w, flips_ref):
        # Clamp to {0,1} so out-of-contract flip values cannot produce OOB block indices.
        f = jnp.minimum(jnp.maximum(flips_ref[n], 0), 1)
        return (n, r, w + f * (nW - 1 - 2 * w))  # w (identity) or nW-1-w (mirror)

    block = (pl.Squeezed(), TS, WT)
    out3 = pl.pallas_call(
        _per_sample_kernel,
        out_shape=jax.ShapeDtypeStruct((N, R, W), x.dtype),
        grid_spec=pltpu.PrefetchScalarGridSpec(
            num_scalar_prefetch=1,
            grid=grid,
            in_specs=[pl.BlockSpec(block, in_map, pipeline_mode=pl.Buffered(bc))],
            out_specs=pl.BlockSpec(block, out_map, pipeline_mode=pl.Buffered(bc)),
        ),
        compiler_params=pltpu.CompilerParams(
            # Output blocks are a bijection of (n, r, w) -> all axes are independent.
            dimension_semantics=("parallel", "parallel", "parallel"),
            vmem_limit_bytes=cfg["vmem_limit_bytes"],
        ),
        # NOTE: no input_output_aliases here — the mirrored out_map makes in/out block
        # indices differ for flipped samples, so aliasing would create a RAW hazard.
    )(flips, x3)
    return out3.reshape(N, C, H, W)


def horizontal_flip_layer(x, flips, *, donate=False):
    """x: [N, C, H, W]; flips: int[N] of 0/1 (nonzero => flip along W)."""
    N, C, H, W = x.shape
    flips = flips.astype(jnp.int32)
    cfg = _device_config()
    per_sample_bytes = C * H * W * x.dtype.itemsize

    if W % 128 == 0 and (per_sample_bytes >= _PER_SAMPLE_MIN_BYTES or W > 128):
        return _flip_per_sample(x, flips, cfg)
    return _flip_fused_rows(x, flips, cfg, donate=donate)


def horizontal_flip_forward(x, key):
    """Full forward matching HorizontalFlipLayer.forward.

    The module's `_eye` buffer only builds theta; since the resulting affine transform is
    exactly identity-or-flip, no affine parameters are needed at runtime.
    """
    N = x.shape[0]
    # r_sign = bernoulli(0.5) * 2 - 1 ;  flip  <=>  r_sign == -1
    r_sign = jax.random.bernoulli(key, p=0.5, shape=(N,)).astype(jnp.float32) * 2.0 - 1.0
    flips = (r_sign < 0).astype(jnp.int32)
    return horizontal_flip_layer(x, flips), flips


if __name__ == "__main__":
    key = jax.random.PRNGKey(0)
    k1, k2, k3, k4 = jax.random.split(key, 4)

    # --- Case 1: module-like small shape (W=16) -> packed fused-row path (128-lane rows) ---
    N, C, H, W = 2, 4, 16, 16
    x1 = jax.random.normal(k1, (N, C, H, W), dtype=jnp.float32)

    out1, flips1 = horizontal_flip_forward(x1, k2)
    out1 = jax.block_until_ready(out1)
    ref1 = jnp.where(flips1[:, None, None, None] != 0, x1[..., ::-1], x1)
    assert out1.shape == x1.shape and out1.dtype == x1.dtype
    assert bool(jnp.array_equal(out1, ref1))

    # Deterministic flags so both flip and identity rows are exercised; also test donation.
    flips_det = jnp.array([1, 0], dtype=jnp.int32)
    ref1b = jnp.where(flips_det[:, None, None, None] != 0, x1[..., ::-1], x1)
    out1b = jax.block_until_ready(horizontal_flip_layer(x1, flips_det))
    assert bool(jnp.array_equal(out1b, ref1b))
    out1c = jax.block_until_ready(horizontal_flip_layer(x1, flips_det, donate=True))
    assert bool(jnp.array_equal(out1c, ref1b))

    # --- Case 2: fused lane-dense path with W == 128 (k == 1, full-row lax.rev) ---
    x2 = jax.random.normal(k3, (2, 2, 8, 128), dtype=jnp.float32)
    out2 = jax.block_until_ready(horizontal_flip_layer(x2, flips_det))
    ref2 = jnp.where(flips_det[:, None, None, None] != 0, x2[..., ::-1], x2)
    assert bool(jnp.array_equal(out2, ref2))

    # --- Case 3: per-sample mirrored-column path (W = 256 > 128) ---
    x3 = jax.random.normal(k4, (2, 3, 8, 256), dtype=jnp.float32)
    out3 = jax.block_until_ready(horizontal_flip_layer(x3, flips_det))
    ref3 = jnp.where(flips_det[:, None, None, None] != 0, x3[..., ::-1], x3)
    assert bool(jnp.array_equal(out3, ref3))

    # --- Case 4: general fallback (W not a power of two) ---
    x4 = jax.random.normal(k2, (2, 1, 12, 12), dtype=jnp.float32)
    out4 = jax.block_until_ready(horizontal_flip_layer(x4, flips_det))
    ref4 = jnp.where(flips_det[:, None, None, None] != 0, x4[..., ::-1], x4)
    assert bool(jnp.array_equal(out4, ref4))

    print("KERNEL_OK")
</pallas_src>

<mosaic_0001>
module attributes {stable_mosaic.version = 11 : i64} {
  func.func @_rowflip_kernel(%arg0: i32, %arg1: memref<16x1xi32, #tpu.memory_space<vmem>>, %arg2: memref<16x128xf32, #tpu.memory_space<vmem>>, %arg3: memref<16x128xf32, #tpu.memory_space<vmem>>) attributes {dimension_semantics = [#tpu.dimension_semantics<parallel>], iteration_bounds = array<i64: 1>, scalar_prefetch = 0 : i64, scratch_operands = 0 : i64, tpu.core_type = #tpu.core_type<tc>, window_params = [{transform_indices = @transform_0, window_bounds = array<i64: 16, 1>}, {pipeline_mode = #tpu.pipeline_mode<double_buffered>, transform_indices = @transform_1, window_bounds = array<i64: 16, 128>}, {pipeline_mode = #tpu.pipeline_mode<double_buffered>, transform_indices = @transform_2, window_bounds = array<i64: 16, 128>}]} {
    %c0 = arith.constant 0 : index
    %c0_0 = arith.constant 0 : index
    %0 = vector.load %arg2[%c0, %c0_0] : memref<16x128xf32, #tpu.memory_space<vmem>>, vector<16x128xf32>
    %1 = tpu.iota {dimensions = array<i32: 1>} : vector<1x128xi32>
    %c1_i32 = arith.constant 1 : i32
    %2 = tpu.dynamic_rotate %0 by %c1_i32 dim 1 : vector<16x128xf32>, i32 -> vector<16x128xf32>
    %c127_i32 = arith.constant 127 : i32
    %3 = tpu.dynamic_rotate %0 by %c127_i32 dim 1 : vector<16x128xf32>, i32 -> vector<16x128xf32>
    %c1_i32_1 = arith.constant 1 : i32
    %4 = tpu.dynamic_rotate %1 by %c1_i32_1 dim 1 : vector<1x128xi32>, i32 -> vector<1x128xi32>
    %5 = arith.xori %4, %1 : vector<1x128xi32>
    %c1_i32_2 = arith.constant 1 : i32
    %6 = vector.broadcast %c1_i32_2 : i32 to vector<1x128xi32>
    %7 = arith.cmpi eq, %5, %6 : vector<1x128xi32>
    %8 = vector.shape_cast %7 : vector<1x128xi1> to vector<1x128xi1>
    %9 = vector.broadcast %8 : vector<1x128xi1> to vector<16x128xi1>
    %10 = arith.select %9, %2, %3 : vector<16x128xi1>, vector<16x128xf32>
    %c2_i32 = arith.constant 2 : i32
    %11 = tpu.dynamic_rotate %10 by %c2_i32 dim 1 : vector<16x128xf32>, i32 -> vector<16x128xf32>
    %c126_i32 = arith.constant 126 : i32
    %12 = tpu.dynamic_rotate %10 by %c126_i32 dim 1 : vector<16x128xf32>, i32 -> vector<16x128xf32>
    %c2_i32_3 = arith.constant 2 : i32
    %13 = tpu.dynamic_rotate %1 by %c2_i32_3 dim 1 : vector<1x128xi32>, i32 -> vector<1x128xi32>
    %14 = arith.xori %13, %1 : vector<1x128xi32>
    %c2_i32_4 = arith.constant 2 : i32
    %15 = vector.broadcast %c2_i32_4 : i32 to vector<1x128xi32>
    %16 = arith.cmpi eq, %14, %15 : vector<1x128xi32>
    %17 = vector.shape_cast %16 : vector<1x128xi1> to vector<1x128xi1>
    %18 = vector.broadcast %17 : vector<1x128xi1> to vector<16x128xi1>
    %19 = arith.select %18, %11, %12 : vector<16x128xi1>, vector<16x128xf32>
    %c4_i32 = arith.constant 4 : i32
    %20 = tpu.dynamic_rotate %19 by %c4_i32 dim 1 : vector<16x128xf32>, i32 -> vector<16x128xf32>
    %c124_i32 = arith.constant 124 : i32
    %21 = tpu.dynamic_rotate %19 by %c124_i32 dim 1 : vector<16x128xf32>, i32 -> vector<16x128xf32>
    %c4_i32_5 = arith.constant 4 : i32
    %22 = tpu.dynamic_rotate %1 by %c4_i32_5 dim 1 : vector<1x128xi32>, i32 -> vector<1x128xi32>
    %23 = arith.xori %22, %1 : vector<1x128xi32>
    %c4_i32_6 = arith.constant 4 : i32
    %24 = vector.broadcast %c4_i32_6 : i32 to vector<1x128xi32>
    %25 = arith.cmpi eq, %23, %24 : vector<1x128xi32>
    %26 = vector.shape_cast %25 : vector<1x128xi1> to vector<1x128xi1>
    %27 = vector.broadcast %26 : vector<1x128xi1> to vector<16x128xi1>
    %28 = arith.select %27, %20, %21 : vector<16x128xi1>, vector<16x128xf32>
    %c8_i32 = arith.constant 8 : i32
    %29 = tpu.dynamic_rotate %28 by %c8_i32 dim 1 : vector<16x128xf32>, i32 -> vector<16x128xf32>
    %c120_i32 = arith.constant 120 : i32
    %30 = tpu.dynamic_rotate %28 by %c120_i32 dim 1 : vector<16x128xf32>, i32 -> vector<16x128xf32>
    %c8_i32_7 = arith.constant 8 : i32
    %31 = tpu.dynamic_rotate %1 by %c8_i32_7 dim 1 : vector<1x128xi32>, i32 -> vector<1x128xi32>
    %32 = arith.xori %31, %1 : vector<1x128xi32>
    %c8_i32_8 = arith.constant 8 : i32
    %33 = vector.broadcast %c8_i32_8 : i32 to vector<1x128xi32>
    %34 = arith.cmpi eq, %32, %33 : vector<1x128xi32>
    %35 = vector.shape_cast %34 : vector<1x128xi1> to vector<1x128xi1>
    %36 = vector.broadcast %35 : vector<1x128xi1> to vector<16x128xi1>
    %37 = arith.select %36, %29, %30 : vector<16x128xi1>, vector<16x128xf32>
    %c0_9 = arith.constant 0 : index
    %c0_10 = arith.constant 0 : index
    %38 = vector.load %arg1[%c0_9, %c0_10] : memref<16x1xi32, #tpu.memory_space<vmem>>, vector<16x1xi32>
    %c0_i32 = arith.constant 0 : i32
    %39 = vector.broadcast %c0_i32 : i32 to vector<16x1xi32>
    %40 = arith.cmpi ne, %38, %39 : vector<16x1xi32>
    %41 = vector.shape_cast %40 : vector<16x1xi1> to vector<16x1xi1>
    %42 = vector.broadcast %41 : vector<16x1xi1> to vector<16x128xi1>
    %43 = arith.select %42, %37, %0 : vector<16x128xi1>, vector<16x128xf32>
    %c0_11 = arith.constant 0 : index
    %c0_12 = arith.constant 0 : index
    %44 = vector.load %arg3[%c0_11, %c0_12] : memref<16x128xf32, #tpu.memory_space<vmem>>, vector<16x128xf32>
    tpu.vector_store %arg3[%c0_11, %c0_12], %43 {strides = array<i32>} : memref<16x128xf32, #tpu.memory_space<vmem>>, vector<16x128xf32>,
    return
  }
  func.func @transform_0(%arg0: i32) -> (i32, i32) {
    %c0_i32 = arith.constant 0 : i32
    %c0_i32_0 = arith.constant 0 : i32
    return %arg0, %c0_i32 : i32, i32
  }
  func.func @transform_1(%arg0: i32) -> (i32, i32) {
    %c0_i32 = arith.constant 0 : i32
    %c0_i32_0 = arith.constant 0 : i32
    return %arg0, %c0_i32 : i32, i32
  }
  func.func @transform_2(%arg0: i32) -> (i32, i32) {
    %c0_i32 = arith.constant 0 : i32
    %c0_i32_0 = arith.constant 0 : i32
    return %arg0, %c0_i32 : i32, i32
  }
}

</mosaic_0001>

<bundles_post_ra>
// kernel: tpu_custom_call.1
= control target key start
LH: loop header
LB: loop body
LE: loop exit
PB: predicated region body
PF: predicated region fallthrough
CT: control target
= control target key end

     0   :  { %v14_v0 = vlaneseq  ;;  %s167_s11 = smov 1   ;;  %v168_v2 = vmov 0   ;;  %s255_s0 = inlined_call_operand.vmem [shape: s32[16,1], index: 0, kind: input, shape index: {}]   ;;  %s256_s1 = inlined_call_operand.vmem [shape: f32[16,128], index: 1, kind: input, shape index: {}]   ;;  %s257_s2 = inlined_call_operand.hbm [shape: f32[16,128], index: 2, kind: output, shape index: {}]  }
   0x1   :  { %v196_v1 = vld [vmem:[%s256_s1 + $0x8] sm:$0xff]  ;;  %141 = vset.pattern.permute.xlu0 %v168_v2 }
   0x2   :  { %18 = vrot.lane.b32.xlu1 %v196_v1, %s167_s11 }
   0x3   :  { %7 = vsyncpa [#allocation3], 0  ;;  %v200_v3 = vand.u32 127, %v14_v0  ;;  %142 = vset.pattern.permute.xlu1 %v168_v2  ;;  %v207_v4 = vld [vmem:[%s256_s1] sm:$0xff]  ;;  %s169_s14 = smov 127   ;;  %s170_s15 = smov 2  }
   0x4   :  { %v30_v5 = vshrl.u32 %v14_v0, 7  ;;  %s171_s1 = smov 126   ;;  %s172_s16 = smov 4   ;;  %v96_v27 = vld [vmem:[%s255_s0] sm:$0xff]  ;;  %v97_v28 = vld [vmem:[%s255_s0 + $0x8] sm:$0xff] }
   0x5   :  { %24 = vrot.lane.b32.xlu0 %v200_v3, %s167_s11  ;;  %vm98_vm4 = vcmp.ne.s32.totalorder %v96_v27, 0  ;;  %s173_s21 = smov 124   ;;  %vm99_vm5 = vcmp.ne.s32.totalorder %v97_v28, 0  ;;  %s174_s22 = smov 8  }
   0x6   :  { %20 = vrot.lane.b32.xlu1 %v207_v4, %s169_s14  ;;  %v213_v8 = vsub.s32 0, %v30_v5  ;;  %v100_v29 = vsel %vm98_vm4, 1, %v168_v2  ;;  %v101_v30 = vsel %vm99_vm5, 1, %v168_v2  ;;  %s175_s0 = smov 120   ;;  %s176_s23 = smov [#allocation2]  }
   0x7   :  { %s119_s24 = sshll.u32 %s176_s23, 4  ;;  %s120_s24 = int_to_ptr.vmem [resolvable:$true] %s119_s24 }
   0x8   :  { %s143_s25 = scalar_lea.vmem %s120_s24, 256  ;;  %p148_p1 = scmp.lt.s32.totalorder %s120_s24, %s120_s24 }
   0x9   :  { %16 = vrot.lane.b32.xlu0 %v207_v4, %s167_s11  ;;  %p144_p0 = scmp.ne.s32.totalorder %s120_s24, %s143_s25  ;;  %p149_p2 = scmp.lt.s32.totalorder %s143_s25, %s143_s25 }
   0xa   :  { %44 = vrot.lane.b32.xlu1 %v200_v3, %s170_s15 }
   0xb   :  { %p150_p3 = por %p149_p2, %p148_p1 }
   0xd   :  { %22 = vrot.lane.b32.xlu0 %v196_v1, %s169_s14  ;;  %p151_p4 = pnand %p150_p3, %p144_p0 }
  0x74   :  { %v19_v6 = vpop.permute.xlu1 %18 }
  0x77   :  { %v25_v7 = vpop.permute.xlu0 %24 }
  0x78   :  { %v26_v9 = vxor.u32 %v25_v7, %v200_v3  ;;  %v21_v13 = vpop.permute.xlu1 %20 }
  0x7a   :  { %vm27_vm0 = vcmp.eq.s32.totalorder %v26_v9, 1 }
  0x7b   :  { %v28_v10 = vsel %vm27_vm0, 1, %v168_v2  ;;  %v17_v11 = vpop.permute.xlu0 %16 }
  0x7c   :  { %v32_v12 = vrot.slane %v28_v10, %v213_v8  ;;  %v45_v17 = vpop.permute.xlu1 %44 }
  0x7d   :  { %v46_v18 = vxor.u32 %v45_v17, %v200_v3 }
  0x7e   :  { %vm33_vm1 = vcmp.eq.s32.totalorder %v32_v12, 1 }
  0x7f   :  { %v23_v14 = vpop.permute.xlu0 %22  ;;  %v34_v15 = vsel %vm33_vm1, %v17_v11, %v21_v13  ;;  %vm47_vm2 = vcmp.eq.s32.totalorder %v46_v18, 2 }
  0x80   :  { %36 = vrot.lane.b32.xlu0 %v34_v15, %s170_s15  ;;  %v35_v16 = vsel %vm33_vm1, %v19_v6, %v23_v14  ;;  %v48_v19 = vsel %vm47_vm2, 1, %v168_v2 }
  0x81   :  { %38 = vrot.lane.b32.xlu1 %v35_v16, %s170_s15  ;;  %v52_v20 = vrot.slane %v48_v19, %v213_v8 }
  0x83   :  { %vm53_vm3 = vcmp.eq.s32.totalorder %v52_v20, 1 }
  0x84   :  { %40 = vrot.lane.b32.xlu0 %v34_v15, %s171_s1 }
  0x85   :  { %42 = vrot.lane.b32.xlu1 %v35_v16, %s171_s1 }
  0x88   :  { %64 = vrot.lane.b32.xlu0 %v200_v3, %s172_s16 }
  0xf2   :  { %v37_v21 = vpop.permute.xlu0 %36 }
  0xf3   :  { %v39_v22 = vpop.permute.xlu1 %38 }
  0xf6   :  { %v41_v23 = vpop.permute.xlu0 %40 }
  0xf7   :  { %v43_v24 = vpop.permute.xlu1 %42  ;;  %v54_v25 = vsel %vm53_vm3, %v37_v21, %v41_v23 }
  0xf8   :  { %56 = vrot.lane.b32.xlu1 %v54_v25, %s172_s16  ;;  %v55_v26 = vsel %vm53_vm3, %v39_v22, %v43_v24 }
  0xf9   :  { %58 = vrot.lane.b32.xlu0 %v55_v26, %s172_s16 }
  0xfa   :  { %v65_v31 = vpop.permute.xlu0 %64 }
  0xfb   :  { %v66_v32 = vxor.u32 %v65_v31, %v200_v3 }
  0xfc   :  { %60 = vrot.lane.b32.xlu1 %v54_v25, %s173_s21 }
  0xfd   :  { %62 = vrot.lane.b32.xlu0 %v55_v26, %s173_s21  ;;  %vm67_vm6 = vcmp.eq.s32.totalorder %v66_v32, 4 }
  0xfe   :  { %v68_v33 = vsel %vm67_vm6, 1, %v168_v2 }
  0xff   :  { %v72_v34 = vrot.slane %v68_v33, %v213_v8 }
 0x100   :  { %84 = vrot.lane.b32.xlu1 %v200_v3, %s174_s22 }
 0x101   :  { %103 = vperm.xlu0 %141, %v100_v29   ;;  %vm73_vm7 = vcmp.eq.s32.totalorder %v72_v34, 1 }
 0x104   :  { %106 = vperm.xlu1 %142, %v101_v30  }
 0x16a   :  { %v57_v35 = vpop.permute.xlu1 %56 }
 0x16b   :  { %v59_v36 = vpop.permute.xlu0 %58 }
 0x16e   :  { %v61_v37 = vpop.permute.xlu1 %60 }
 0x16f   :  { %v63_v38 = vpop.permute.xlu0 %62  ;;  %v74_v39 = vsel %vm73_vm7, %v57_v35, %v61_v37 }
 0x170   :  { %76 = vrot.lane.b32.xlu1 %v74_v39, %s174_s22  ;;  %v75_v40 = vsel %vm73_vm7, %v59_v36, %v63_v38 }
 0x171   :  { %78 = vrot.lane.b32.xlu0 %v75_v40, %s174_s22 }
 0x172   :  { %v85_v41 = vpop.permute.xlu1 %84 }
 0x173   :  { %v86_v42 = vxor.u32 %v85_v41, %v200_v3 }
 0x174   :  { %80 = vrot.lane.b32.xlu1 %v74_v39, %s175_s0 }
 0x175   :  { %82 = vrot.lane.b32.xlu0 %v75_v40, %s175_s0  ;;  %vm87_vm8 = vcmp.eq.s32.totalorder %v86_v42, 8 }
 0x176   :  { %v88_v45 = vsel %vm87_vm8, 1, %v168_v2 }
 0x177   :  { %v92_v46 = vrot.slane %v88_v45, %v213_v8 }
 0x179   :  { %vm93_vm9 = vcmp.eq.s32.totalorder %v92_v46, 1 }
 0x180   :  { %v104_v44 = vpop.permute.xlu0 %103 }
 0x181   :  { %vm108_vm10 = vcmp.eq.s32.totalorder %v104_v44, 1 }
 0x183   :  { %v107_v43 = vpop.permute.xlu1 %106 }
 0x184   :  { %vm109_vm11 = vcmp.eq.s32.totalorder %v107_v43, 1 }
 0x1e2   :  { %v77_v47 = vpop.permute.xlu1 %76 }
 0x1e3   :  { %v79_v48 = vpop.permute.xlu0 %78 }
 0x1e6   :  { %v81_v49 = vpop.permute.xlu1 %80 }
 0x1e7   :  { %v94_v50 = vsel %vm93_vm9, %v77_v47, %v81_v49  ;;  %v83_v51 = vpop.permute.xlu0 %82 }
 0x1e8   :  { %v110_v52 = vsel %vm108_vm10, %v94_v50, %v207_v4  ;;  %v95_v53 = vsel %vm93_vm9, %v79_v48, %v83_v51 }
 0x1e9   :  { %112 = vst [vmem:[#allocation2] sm:$0xff] %v110_v52  ;;  %v111_v54 = vsel %vm109_vm11, %v95_v53, %v196_v1 }
 0x1ea   :  { %113 = vst [vmem:[#allocation2 + $0x8] sm:$0xff] %v111_v54 }
 0x1eb   :  { %154 = shalt.err (!%p151_p4)
}
 0x1ec   :  { %s155_s28 = scalar_lea.hbm %s257_s2, 256 }
 0x1ed   :  { %p156_p5 = scmp.ne.s32.totalorder %s257_s2, %s155_s28  ;;  %p159_p6 = scmp.lt.u32.totalorder %s155_s28, %s257_s2 }
 0x1ef   :  { %p161_p7 = pnand %p159_p6, %p156_p5 }
 0x1f1   :  { %164 = shalt.err (!%p161_p7)
}
 0x1f2   :  { %s177_s5 = smov 128  }
 0x1f3   :  { %125 = dma.vmem_to_hbm [thread:$0]  %s120_s24, 256, %s257_s2, [#allocation3], %s177_s5, %s177_s5, %s174_s22  }
 0x1f4   :  { %165 = dma.done.wait [#allocation3], 256  }
 0x1f5   :  { %166 = vsyncadd [#allocation3], 4294967040 }
 0x1f6   :  { %129 = vsyncpa [#allocation3], 1 }

</bundles_post_ra>
